<compile_context>
chip_gen: v7x
topology: tpu7x:2x2x1
jax: 0.10.0
libtpu: 0.0.40
codegen_flags: <defaults>
</compile_context>

<pallas_src>
import jax
import jax.numpy as jnp
from jax import lax
from jax.experimental import pallas as pl
from jax.experimental.pallas import tpu as pltpu


def _make_attention_kernel(n_valid, tn, n_tiles, need_mask):
    """Builds the unified (any K) attention kernel for a fixed tiling."""

    def kernel(x_ref, w1_ref, b1_ref, w2_ref, b2_ref, m_ref, a_ref,
               mmax_sc, lsum_sc, acc_sc):
        # x_ref: (tn, L); w1: (L, D); b1: (1, D); w2: (K, D); b2: (K, 1)
        # m_ref: (K, L); a_ref: (K, N_pad)   -- both resident across the N-tile axis
        nt = pl.program_id(1)

        @pl.when(nt == 0)
        def _init():
            mmax_sc[...] = jnp.full(mmax_sc.shape, -jnp.inf, jnp.float32)
            lsum_sc[...] = jnp.zeros(lsum_sc.shape, jnp.float32)
            acc_sc[...] = jnp.zeros(acc_sc.shape, jnp.float32)

        x_t = x_ref[...].astype(jnp.float32)                            # (tn, L)

        # Linear(L, D) + tanh: the big MXU matmul (tn >= 256 rows once N is tiled).
        h = jnp.tanh(
            jnp.dot(x_t, w1_ref[...].astype(jnp.float32),
                    preferred_element_type=jnp.float32) + b1_ref[...])  # (tn, D)

        # Linear(D, K), produced directly lane-dense as (K, tn):
        # logits = W2 @ h^T (contract D of both operands -> no K<->N transpose).
        logits = lax.dot_general(
            w2_ref[...].astype(jnp.float32), h,
            (((1,), (1,)), ((), ())),
            preferred_element_type=jnp.float32) + b2_ref[...]           # (K, tn)

        if need_mask:
            lane = lax.broadcasted_iota(jnp.int32, (1, tn), 1) + nt * tn
            logits = jnp.where(lane < n_valid, logits, -jnp.inf)

        # Online softmax update (lane reductions over the tile).
        tile_max = jnp.max(logits, axis=-1, keepdims=True)              # (K, 1)
        m_new = jnp.maximum(mmax_sc[...], tile_max)
        alpha = jnp.exp(mmax_sc[...] - m_new)                           # (K, 1)
        p = jnp.exp(logits - m_new)                                     # (K, tn)
        lsum_sc[...] = alpha * lsum_sc[...] + jnp.sum(p, axis=-1, keepdims=True)
        acc_sc[...] = alpha * acc_sc[...] + jnp.dot(
            p, x_t, preferred_element_type=jnp.float32)                 # (K, L)
        mmax_sc[...] = m_new

        # Stage raw (masked) logits lane-dense into the resident A block.
        if n_tiles == 1:
            a_ref[...] = logits.astype(a_ref.dtype)
        else:
            col = pl.multiple_of(nt * tn, 128)      # tn % 128 == 0 when tiled
            a_ref[:, pl.ds(col, tn)] = logits.astype(a_ref.dtype)

        @pl.when(nt == n_tiles - 1)
        def _finalize():
            inv_l = pl.reciprocal(lsum_sc[...], approx=False)           # (K, 1)
            m_ref[...] = (acc_sc[...] * inv_l).astype(m_ref.dtype)
            a_raw = a_ref[...].astype(jnp.float32)                      # (K, N_pad)
            a_ref[...] = (jnp.exp(a_raw - mmax_sc[...]) * inv_l).astype(a_ref.dtype)

    return kernel


def attention_module(x, w1, b1, w2, b2, *, n_tile=512):
    """x: (B, N, L); w1: (L, D); b1: (D,); w2: (D, K); b2: (K,).
    Returns (M: (B, K, L), A: (B, K, N)), matching the PyTorch AttentionModule."""
    B, N, L = x.shape
    D = w1.shape[1]
    K = w2.shape[1]
    itemsize = x.dtype.itemsize

    # N tiling: single block for small bags, lane-aligned tiles (+ masked tail) else.
    if N <= n_tile:
        tn, n_tiles, n_pad = N, 1, N
    else:
        tn = max(128, (n_tile // 128) * 128)
        n_tiles = -(-N // tn)
        n_pad = n_tiles * tn
    need_mask = n_pad != N
    x_in = jnp.pad(x, ((0, 0), (0, n_pad - N), (0, 0))) if need_mask else x

    b1_in = b1.reshape(1, D)
    w2_in = jnp.transpose(w2)          # (K, D): contraction dim (D) on lanes
    b2_in = b2.reshape(K, 1)

    kernel = _make_attention_kernel(N, tn, n_tiles, need_mask)

    grid_spec = pltpu.PrefetchScalarGridSpec(
        num_scalar_prefetch=0,
        grid=(B, n_tiles),
        in_specs=[
            pl.BlockSpec((None, tn, L), lambda b, t: (b, t, 0)),    # x tile (pipelined)
            pl.BlockSpec((L, D), lambda b, t: (0, 0)),              # W1
            pl.BlockSpec((1, D), lambda b, t: (0, 0)),              # b1
            pl.BlockSpec((K, D), lambda b, t: (0, 0)),              # W2 (row layout)
            pl.BlockSpec((K, 1), lambda b, t: (0, 0)),              # b2
        ],
        out_specs=[
            pl.BlockSpec((None, K, L), lambda b, t: (b, 0, 0)),       # M (resident)
            pl.BlockSpec((None, K, n_pad), lambda b, t: (b, 0, 0)),   # A (resident)
        ],
        scratch_shapes=[
            pltpu.VMEM((K, 1), jnp.float32),    # running max
            pltpu.VMEM((K, 1), jnp.float32),    # running sum
            pltpu.VMEM((K, L), jnp.float32),    # M accumulator
        ],
    )

    # Explicit scoped-VMEM budget with headroom, clamped so it is valid on every
    # generation (v7x: 64 MiB physical; v5e: 16 MiB default scoped).
    vmem_needed = (
        2 * tn * L * itemsize                       # x, double buffered
        + 2 * (L * D + D) * w1.dtype.itemsize       # W1 + b1
        + 2 * (K * D + K) * w2.dtype.itemsize       # W2 + b2
        + 2 * (K * L + K * n_pad) * itemsize        # outputs
        + (K * L + 2 * K) * 4                       # f32 scratch
    )
    vmem_limit = int(min(48 * 1024 * 1024, max(2 * vmem_needed, 16 * 1024 * 1024)))

    cost = pl.CostEstimate(
        flops=2 * B * N * L * D + 2 * B * N * D * K + 2 * B * K * N * L,
        transcendentals=B * N * D + 2 * B * N * K,
        bytes_accessed=itemsize * (B * N * L + B * K * L + B * K * N)
        + 4 * (L * D + D + D * K + K),
    )

    m_out, a_out = pl.pallas_call(
        kernel,
        out_shape=(
            jax.ShapeDtypeStruct((B, K, L), x.dtype),
            jax.ShapeDtypeStruct((B, K, n_pad), x.dtype),
        ),
        grid_spec=grid_spec,
        compiler_params=pltpu.CompilerParams(
            dimension_semantics=("parallel", "arbitrary"),
            vmem_limit_bytes=vmem_limit,
        ),
        cost_estimate=cost,
    )(x_in, w1, b1_in, w2_in, b2_in)

    if need_mask:
        a_out = a_out[:, :, :N]
    return m_out, a_out


def reference(x, w1, b1, w2, b2):
    h = jnp.tanh(jnp.einsum("bnl,ld->bnd", x, w1) + b1)
    logits = jnp.einsum("bnd,dk->bnk", h, w2) + b2
    a = jax.nn.softmax(jnp.swapaxes(logits, 1, 2), axis=-1)
    m = jnp.einsum("bkn,bnl->bkl", a, x)
    return m, a


if __name__ == "__main__":
    def make_inputs(key, B, N, L, D, K):
        kx, kw1, kb1, kw2, kb2 = jax.random.split(key, 5)
        bound1 = 1.0 / (L ** 0.5)
        bound2 = 1.0 / (D ** 0.5)
        x = jax.random.normal(kx, (B, N, L), dtype=jnp.float32)
        w1 = jax.random.uniform(kw1, (L, D), jnp.float32, -bound1, bound1)
        b1 = jax.random.uniform(kb1, (D,), jnp.float32, -bound1, bound1)
        w2 = jax.random.uniform(kw2, (D, K), jnp.float32, -bound2, bound2)
        b2 = jax.random.uniform(kb2, (K,), jnp.float32, -bound2, bound2)
        return x, w1, b1, w2, b2

    # Case 1: PyTorch module defaults (L=512, D=128, K=1), small bag -> single tile.
    B, N, L, D, K = 2, 8, 512, 128, 1
    x, w1, b1, w2, b2 = make_inputs(jax.random.PRNGKey(0), B, N, L, D, K)
    m, a = attention_module(x, w1, b1, w2, b2)
    jax.block_until_ready((m, a))
    m_r, a_r = reference(x, w1, b1, w2, b2)
    assert m.shape == (B, K, L) and a.shape == (B, K, N)
    assert jnp.allclose(m, m_r, atol=1e-4, rtol=1e-4)
    assert jnp.allclose(a, a_r, atol=1e-5, rtol=1e-5)

    # Case 2: K=3, bag larger than the tile -> exercises the N-tiled, pipelined
    # online-softmax path with a masked tail tile and the parallel B axis.
    B2, N2, K2 = 2, 300, 3
    x2, w12, b12, w22, b22 = make_inputs(jax.random.PRNGKey(1), B2, N2, L, D, K2)
    m2, a2 = attention_module(x2, w12, b12, w22, b22, n_tile=128)
    jax.block_until_ready((m2, a2))
    m2_r, a2_r = reference(x2, w12, b12, w22, b22)
    assert m2.shape == (B2, K2, L) and a2.shape == (B2, K2, N2)
    assert jnp.allclose(m2, m2_r, atol=1e-4, rtol=1e-4)
    assert jnp.allclose(a2, a2_r, atol=1e-5, rtol=1e-5)

    print("KERNEL_OK")
</pallas_src>

<mosaic_0001>
module attributes {stable_mosaic.version = 11 : i64} {
  func.func @kernel(%arg0: i32, %arg1: i32, %arg2: memref<1x8x512xf32, #tpu.memory_space<vmem>>, %arg3: memref<512x128xf32, #tpu.memory_space<vmem>>, %arg4: memref<1x128xf32, #tpu.memory_space<vmem>>, %arg5: memref<1x128xf32, #tpu.memory_space<vmem>>, %arg6: memref<1x1xf32, #tpu.memory_space<vmem>>, %arg7: memref<1x1x512xf32, #tpu.memory_space<vmem>>, %arg8: memref<1x1x8xf32, #tpu.memory_space<vmem>>, %arg9: memref<1x1xf32, #tpu.memory_space<vmem>>, %arg10: memref<1x1xf32, #tpu.memory_space<vmem>>, %arg11: memref<1x512xf32, #tpu.memory_space<vmem>>) attributes {dimension_semantics = [#tpu.dimension_semantics<parallel>, #tpu.dimension_semantics<arbitrary>], iteration_bounds = array<i64: 2, 1>, scalar_prefetch = 0 : i64, scratch_operands = 3 : i64, tpu.core_type = #tpu.core_type<tc>, window_params = [{transform_indices = @transform_0, window_bounds = array<i64: 1, 8, 512>}, {pipeline_mode = #tpu.pipeline_mode<synchronous>, transform_indices = @transform_1, window_bounds = array<i64: 512, 128>}, {pipeline_mode = #tpu.pipeline_mode<synchronous>, transform_indices = @transform_2, window_bounds = array<i64: 1, 128>}, {pipeline_mode = #tpu.pipeline_mode<synchronous>, transform_indices = @transform_3, window_bounds = array<i64: 1, 128>}, {pipeline_mode = #tpu.pipeline_mode<synchronous>, transform_indices = @transform_4, window_bounds = array<i64: 1, 1>}, {transform_indices = @transform_5, window_bounds = array<i64: 1, 1, 512>}, {transform_indices = @transform_6, window_bounds = array<i64: 1, 1, 8>}]} {
    %c0_i32 = arith.constant 0 : i32
    %0 = arith.cmpi eq, %arg1, %c0_i32 : i32
    %1 = arith.extui %0 : i1 to i32
    %c0_i32_0 = arith.constant 0 : i32
    %2 = arith.cmpi ne, %1, %c0_i32_0 : i32
    scf.if %2 {
      %cst_34 = arith.constant 0xFF800000 : f32
      %45 = vector.broadcast %cst_34 : f32 to vector<1x1xf32>
      %c0_35 = arith.constant 0 : index
      %c0_36 = arith.constant 0 : index
      %46 = vector.load %arg9[%c0_35, %c0_36] : memref<1x1xf32, #tpu.memory_space<vmem>>, vector<1x1xf32>
      tpu.vector_store %arg9[%c0_35, %c0_36], %45 {strides = array<i32>} : memref<1x1xf32, #tpu.memory_space<vmem>>, vector<1x1xf32>,
      %cst_37 = arith.constant 0.000000e+00 : f32
      %47 = vector.broadcast %cst_37 : f32 to vector<1x1xf32>
      %c0_38 = arith.constant 0 : index
      %c0_39 = arith.constant 0 : index
      %48 = vector.load %arg10[%c0_38, %c0_39] : memref<1x1xf32, #tpu.memory_space<vmem>>, vector<1x1xf32>
      tpu.vector_store %arg10[%c0_38, %c0_39], %47 {strides = array<i32>} : memref<1x1xf32, #tpu.memory_space<vmem>>, vector<1x1xf32>,
      %cst_40 = arith.constant 0.000000e+00 : f32
      %49 = vector.broadcast %cst_40 : f32 to vector<1x512xf32>
      %c0_41 = arith.constant 0 : index
      %c0_42 = arith.constant 0 : index
      %50 = vector.load %arg11[%c0_41, %c0_42] : memref<1x512xf32, #tpu.memory_space<vmem>>, vector<1x512xf32>
      tpu.vector_store %arg11[%c0_41, %c0_42], %49 {strides = array<i32>} : memref<1x512xf32, #tpu.memory_space<vmem>>, vector<1x512xf32>,
    } else {
    }
    %c0 = arith.constant 0 : index
    %c0_1 = arith.constant 0 : index
    %c0_2 = arith.constant 0 : index
    %3 = vector.load %arg2[%c0, %c0_1, %c0_2] : memref<1x8x512xf32, #tpu.memory_space<vmem>>, vector<1x8x512xf32>
    %4 = vector.shape_cast %3 : vector<1x8x512xf32> to vector<8x512xf32>
    %c0_3 = arith.constant 0 : index
    %c0_4 = arith.constant 0 : index
    %5 = vector.load %arg3[%c0_3, %c0_4] : memref<512x128xf32, #tpu.memory_space<vmem>>, vector<512x128xf32>
    %cst = arith.constant dense<0.000000e+00> : vector<8x128xf32>
    %6 = tpu.matmul %4, %5, %cst {dimension_numbers = #tpu.dot_dimension_numbers<[1], [0], [0], [1], [0, 0, 1, 1], [], []>} : vector<8x512xf32>, vector<512x128xf32>, vector<8x128xf32> -> vector<8x128xf32>
    %c0_5 = arith.constant 0 : index
    %c0_6 = arith.constant 0 : index
    %7 = vector.load %arg4[%c0_5, %c0_6] : memref<1x128xf32, #tpu.memory_space<vmem>>, vector<1x128xf32>
    %8 = vector.broadcast %7 : vector<1x128xf32> to vector<8x128xf32>
    %9 = arith.addf %6, %8 : vector<8x128xf32>
    %10 = math.tanh %9 : vector<8x128xf32>
    %c0_7 = arith.constant 0 : index
    %c0_8 = arith.constant 0 : index
    %11 = vector.load %arg5[%c0_7, %c0_8] : memref<1x128xf32, #tpu.memory_space<vmem>>, vector<1x128xf32>
    %cst_9 = arith.constant dense<0.000000e+00> : vector<1x8xf32>
    %12 = tpu.matmul %11, %10, %cst_9 {dimension_numbers = #tpu.dot_dimension_numbers<[1], [1], [0], [0], [0, 0, 1, 0], [], []>} : vector<1x128xf32>, vector<8x128xf32>, vector<1x8xf32> -> vector<1x8xf32>
    %c0_10 = arith.constant 0 : index
    %c0_11 = arith.constant 0 : index
    %13 = vector.load %arg6[%c0_10, %c0_11] : memref<1x1xf32, #tpu.memory_space<vmem>>, vector<1x1xf32>
    %14 = vector.broadcast %13 : vector<1x1xf32> to vector<1x8xf32>
    %15 = arith.addf %12, %14 : vector<1x8xf32>
    %cst_12 = arith.constant dense<0xFF800000> : vector<1xf32>
    %16 = vector.multi_reduction <maximumf>, %15, %cst_12 [1] : vector<1x8xf32> to vector<1xf32>
    %17 = vector.shape_cast %16 : vector<1xf32> to vector<1x1xf32>
    %c0_13 = arith.constant 0 : index
    %c0_14 = arith.constant 0 : index
    %18 = vector.load %arg9[%c0_13, %c0_14] : memref<1x1xf32, #tpu.memory_space<vmem>>, vector<1x1xf32>
    %19 = arith.maximumf %18, %17 : vector<1x1xf32>
    %c0_15 = arith.constant 0 : index
    %c0_16 = arith.constant 0 : index
    %20 = vector.load %arg9[%c0_15, %c0_16] : memref<1x1xf32, #tpu.memory_space<vmem>>, vector<1x1xf32>
    %21 = arith.subf %20, %19 : vector<1x1xf32>
    %22 = math.exp %21 : vector<1x1xf32>
    %23 = vector.broadcast %19 : vector<1x1xf32> to vector<1x8xf32>
    %24 = arith.subf %15, %23 : vector<1x8xf32>
    %25 = math.exp %24 : vector<1x8xf32>
    %c0_17 = arith.constant 0 : index
    %c0_18 = arith.constant 0 : index
    %26 = vector.load %arg10[%c0_17, %c0_18] : memref<1x1xf32, #tpu.memory_space<vmem>>, vector<1x1xf32>
    %27 = arith.mulf %22, %26 : vector<1x1xf32>
    %cst_19 = arith.constant dense<0.000000e+00> : vector<1xf32>
    %28 = vector.multi_reduction <add>, %25, %cst_19 [1] : vector<1x8xf32> to vector<1xf32>
    %29 = vector.shape_cast %28 : vector<1xf32> to vector<1x1xf32>
    %30 = arith.addf %27, %29 : vector<1x1xf32>
    %c0_20 = arith.constant 0 : index
    %c0_21 = arith.constant 0 : index
    %31 = vector.load %arg10[%c0_20, %c0_21] : memref<1x1xf32, #tpu.memory_space<vmem>>, vector<1x1xf32>
    tpu.vector_store %arg10[%c0_20, %c0_21], %30 {strides = array<i32>} : memref<1x1xf32, #tpu.memory_space<vmem>>, vector<1x1xf32>,
    %c0_22 = arith.constant 0 : index
    %c0_23 = arith.constant 0 : index
    %32 = vector.load %arg11[%c0_22, %c0_23] : memref<1x512xf32, #tpu.memory_space<vmem>>, vector<1x512xf32>
    %33 = vector.broadcast %22 : vector<1x1xf32> to vector<1x512xf32>
    %34 = arith.mulf %33, %32 : vector<1x512xf32>
    %cst_24 = arith.constant dense<0.000000e+00> : vector<1x512xf32>
    %35 = tpu.matmul %25, %4, %cst_24 {dimension_numbers = #tpu.dot_dimension_numbers<[1], [0], [0], [1], [0, 0, 1, 1], [], []>} : vector<1x8xf32>, vector<8x512xf32>, vector<1x512xf32> -> vector<1x512xf32>
    %36 = arith.addf %34, %35 : vector<1x512xf32>
    %c0_25 = arith.constant 0 : index
    %c0_26 = arith.constant 0 : index
    %37 = vector.load %arg11[%c0_25, %c0_26] : memref<1x512xf32, #tpu.memory_space<vmem>>, vector<1x512xf32>
    tpu.vector_store %arg11[%c0_25, %c0_26], %36 {strides = array<i32>} : memref<1x512xf32, #tpu.memory_space<vmem>>, vector<1x512xf32>,
    %c0_27 = arith.constant 0 : index
    %c0_28 = arith.constant 0 : index
    %38 = vector.load %arg9[%c0_27, %c0_28] : memref<1x1xf32, #tpu.memory_space<vmem>>, vector<1x1xf32>
    tpu.vector_store %arg9[%c0_27, %c0_28], %19 {strides = array<i32>} : memref<1x1xf32, #tpu.memory_space<vmem>>, vector<1x1xf32>,
    %c0_29 = arith.constant 0 : index
    %c0_30 = arith.constant 0 : index
    %c0_31 = arith.constant 0 : index
    %39 = vector.load %arg8[%c0_29, %c0_30, %c0_31] : memref<1x1x8xf32, #tpu.memory_space<vmem>>, vector<1x1x8xf32>
    %40 = vector.shape_cast %39 : vector<1x1x8xf32> to vector<1x8xf32>
    %41 = vector.shape_cast %15 : vector<1x8xf32> to vector<1x1x8xf32>
    tpu.vector_store %arg8[%c0_29, %c0_30, %c0_31], %41 {strides = array<i32>} : memref<1x1x8xf32, #tpu.memory_space<vmem>>, vector<1x1x8xf32>,
    %c0_i32_32 = arith.constant 0 : i32
    %42 = arith.cmpi eq, %arg1, %c0_i32_32 : i32
    %43 = arith.extui %42 : i1 to i32
    %c0_i32_33 = arith.constant 0 : i32
    %44 = arith.cmpi ne, %43, %c0_i32_33 : i32
    scf.if %44 {
      %c0_34 = arith.constant 0 : index
      %c0_35 = arith.constant 0 : index
      %45 = vector.load %arg10[%c0_34, %c0_35] : memref<1x1xf32, #tpu.memory_space<vmem>>, vector<1x1xf32>
      %46 = tpu.reciprocal %45 : vector<1x1xf32> -> vector<1x1xf32>
      %c0_36 = arith.constant 0 : index
      %c0_37 = arith.constant 0 : index
      %47 = vector.load %arg11[%c0_36, %c0_37] : memref<1x512xf32, #tpu.memory_space<vmem>>, vector<1x512xf32>
      %48 = vector.broadcast %46 : vector<1x1xf32> to vector<1x512xf32>
      %49 = arith.mulf %47, %48 : vector<1x512xf32>
      %c0_38 = arith.constant 0 : index
      %c0_39 = arith.constant 0 : index
      %c0_40 = arith.constant 0 : index
      %50 = vector.load %arg7[%c0_38, %c0_39, %c0_40] : memref<1x1x512xf32, #tpu.memory_space<vmem>>, vector<1x1x512xf32>
      %51 = vector.shape_cast %50 : vector<1x1x512xf32> to vector<1x512xf32>
      %52 = vector.shape_cast %49 : vector<1x512xf32> to vector<1x1x512xf32>
      tpu.vector_store %arg7[%c0_38, %c0_39, %c0_40], %52 {strides = array<i32>} : memref<1x1x512xf32, #tpu.memory_space<vmem>>, vector<1x1x512xf32>,
      %c0_41 = arith.constant 0 : index
      %c0_42 = arith.constant 0 : index
      %c0_43 = arith.constant 0 : index
      %53 = vector.load %arg8[%c0_41, %c0_42, %c0_43] : memref<1x1x8xf32, #tpu.memory_space<vmem>>, vector<1x1x8xf32>
      %54 = vector.shape_cast %53 : vector<1x1x8xf32> to vector<1x8xf32>
      %c0_44 = arith.constant 0 : index
      %c0_45 = arith.constant 0 : index
      %55 = vector.load %arg9[%c0_44, %c0_45] : memref<1x1xf32, #tpu.memory_space<vmem>>, vector<1x1xf32>
      %56 = vector.broadcast %55 : vector<1x1xf32> to vector<1x8xf32>
      %57 = arith.subf %54, %56 : vector<1x8xf32>
      %58 = math.exp %57 : vector<1x8xf32>
      %59 = vector.broadcast %46 : vector<1x1xf32> to vector<1x8xf32>
      %60 = arith.mulf %58, %59 : vector<1x8xf32>
      %c0_46 = arith.constant 0 : index
      %c0_47 = arith.constant 0 : index
      %c0_48 = arith.constant 0 : index
      %61 = vector.load %arg8[%c0_46, %c0_47, %c0_48] : memref<1x1x8xf32, #tpu.memory_space<vmem>>, vector<1x1x8xf32>
      %62 = vector.shape_cast %61 : vector<1x1x8xf32> to vector<1x8xf32>
      %63 = vector.shape_cast %60 : vector<1x8xf32> to vector<1x1x8xf32>
      tpu.vector_store %arg8[%c0_46, %c0_47, %c0_48], %63 {strides = array<i32>} : memref<1x1x8xf32, #tpu.memory_space<vmem>>, vector<1x1x8xf32>,
    } else {
    }
    return
  }
  func.func @transform_0(%arg0: i32, %arg1: i32) -> (i32, i32, i32) {
    %c0_i32 = arith.constant 0 : i32
    %c0_i32_0 = arith.constant 0 : i32
    return %arg0, %arg1, %c0_i32 : i32, i32, i32
  }
  func.func @transform_1(%arg0: i32, %arg1: i32) -> (i32, i32) {
    %c0_i32 = arith.constant 0 : i32
    %c0_i32_0 = arith.constant 0 : i32
    %c0_i32_1 = arith.constant 0 : i32
    return %c0_i32, %c0_i32_0 : i32, i32
  }
  func.func @transform_2(%arg0: i32, %arg1: i32) -> (i32, i32) {
    %c0_i32 = arith.constant 0 : i32
    %c0_i32_0 = arith.constant 0 : i32
    %c0_i32_1 = arith.constant 0 : i32
    return %c0_i32, %c0_i32_0 : i32, i32
  }
  func.func @transform_3(%arg0: i32, %arg1: i32) -> (i32, i32) {
    %c0_i32 = arith.constant 0 : i32
    %c0_i32_0 = arith.constant 0 : i32
    %c0_i32_1 = arith.constant 0 : i32
    return %c0_i32, %c0_i32_0 : i32, i32
  }
  func.func @transform_4(%arg0: i32, %arg1: i32) -> (i32, i32) {
    %c0_i32 = arith.constant 0 : i32
    %c0_i32_0 = arith.constant 0 : i32
    %c0_i32_1 = arith.constant 0 : i32
    return %c0_i32, %c0_i32_0 : i32, i32
  }
  func.func @transform_5(%arg0: i32, %arg1: i32) -> (i32, i32, i32) {
    %c0_i32 = arith.constant 0 : i32
    %c0_i32_0 = arith.constant 0 : i32
    %c0_i32_1 = arith.constant 0 : i32
    return %arg0, %c0_i32, %c0_i32_0 : i32, i32, i32
  }
  func.func @transform_6(%arg0: i32, %arg1: i32) -> (i32, i32, i32) {
    %c0_i32 = arith.constant 0 : i32
    %c0_i32_0 = arith.constant 0 : i32
    %c0_i32_1 = arith.constant 0 : i32
    return %arg0, %c0_i32, %c0_i32_0 : i32, i32, i32
  }
}

</mosaic_0001>

<bundles_post_ra>
// kernel: tpu_custom_call.1
= control target key start
LH: loop header
LB: loop body
LE: loop exit
PB: predicated region body
PF: predicated region fallthrough
CT: control target
= control target key end

     0   :  { %s1810_s0 = inlined_call_operand.hbm [shape: f32[2,8,512], index: 0, kind: input, shape index: {}]   ;;  %s1811_s1 = inlined_call_operand.hbm [shape: f32[512,128], index: 1, kind: input, shape index: {}]   ;;  %s1812_s2 = inlined_call_operand.vmem [shape: f32[1,128], index: 2, kind: input, shape index: {}]   ;;  %s1813_s3 = inlined_call_operand.vmem [shape: f32[1,128], index: 3, kind: input, shape index: {}]   ;;  %s1814_s4 = inlined_call_operand.<no memory space> [shape: f32[1,1], index: 4, kind: input, shape index: {}]   ;;  %s1815_s5 = inlined_call_operand.hbm [shape: f32[2,1,512], index: 5, kind: output, shape index: {0}]   ;;  %s1816_s6 = inlined_call_operand.hbm [shape: f32[2,1,8], index: 6, kind: output, shape index: {1}]  }
   0x1   :  { %v12_v0 = vstv %s1814_s4 }
   0x2   :  { %13 = vst [vmem:[#allocation5] sm:$0x1] %v12_v0 }
   0x3   :  { %14 = vsyncpa [#allocation7], 0 }
   0x4   :  { %16 = vsyncpa [#allocation7 + $0x1], 0 }
   0x5   :  { %17 = vsyncpa [#allocation10], 0 }
   0x6   :  { %18 = vsyncpa [#allocation8], 0 }
   0x7   :  { %20 = vsyncpa [#allocation8 + $0x1], 0 }
   0x8   :  { %21 = vsyncpa [#allocation13], 0 }
   0x9   :  { %23 = vsyncpa [#allocation13 + $0x1], 0  ;;  %s1515_s23 = smov 0   ;;  %s1517_s24 = smov 0  }
   0xa   :  { %s1519_s25 = smov 0   ;;  %s1521_s26 = smov 0  }
   0xb   :  { %s1523_s27 = smov 0   ;;  %s1525_s28 = smov 0  }
   0xc LB: > { %s1027_s4 = sadd.s32 4294967295, %s1464_s28   ;;  %s1028_s29 = sadd.s32 4294967294, %s1464_s28   ;;  %s1464_s28 = sphi %s1525_s28, %s29_s28   ;;  %s1460_s27 = sphi %s1523_s27, %s1842_s27   ;;  %s1456_s26 = sphi %s1521_s26, %s1841_s26   ;;  %s1452_s25 = sphi %s1519_s25, %s1840_s25   ;;  %s1448_s24 = sphi %s1517_s24, %s1839_s24   ;;  %s1444_s23 = sphi %s1515_s23, %s1838_s23  }
   0xd   : > { %p63_p0 = scmp.ne.s32.totalorder %s1448_s24, %s1444_s23  ;;  %p1549_p1 = scmp.eq.s32.totalorder %s1027_s4, 0 }
   0xe   : > { %p1553_p2 = scmp.eq.s32.totalorder %s1027_s4, 1  ;;  %p177_p3 = scmp.eq.s32.totalorder %s1028_s29, 1 }
   0xf   : > { %s1821_s30 = scalar_select %p1549_p1, 1, 0 }
  0x10   : > { %s1822_s7 = scalar_select %p1553_p2, 1, 0 }
  0x11   : > { %p1559_p4 = por %p1549_p1, %p63_p0  ;;  %p1029_p5 = scmp.ge.s32.totalorder %s1464_s28, 1 }
  0x12   : > { %p1564_p6 = por %p177_p3, %p63_p0  ;;  %p210_p7 = scmp.lt.s32.totalorder %s1464_s28, 3 }
  0x13   : > { %s1823_s8 = scalar_select %p1559_p4, 1, 0 }
  0x14   : > { %s1824_s9 = scalar_select %p1564_p6, 1, 0 }
  0x15   : > { %p1569_p8 = pnand %p1029_p5, %p210_p7  ;;  %s1466_s11 = smov [#allocation9]  }
  0x16   : > { %s222_s12 = sshll.u32 %s1466_s11, 4  ;;  %s41_s14 = sadd.s32 1, %s1460_s27  ;;  %s223_s12 = int_to_ptr.vmem [resolvable:$true] %s222_s12 }
  0x17   : > { %s1825_s10 = scalar_select %p1569_p8, 1, 0 }
  0x18   : > { %p1201_p9 = pneg %p1569_p8  ;;  %s1288_s17 = scalar_lea.hbm %s1811_s1, 8192 }
  0x19   : > { %p1289_p12 = scmp.ne.s32.totalorder %s1811_s1, %s1288_s17  ;;  %p1295_p5 = scmp.lt.u32.totalorder %s1288_s17, %s1811_s1 }
  0x1a   : > { %p1578_p11 = pnand %p1201_p9, %p1549_p1 }
  0x1c   : > { %p1290_p13 = pneg %p1578_p11 }
  0x1e   : > { %p1291_p0 = pnand %p1290_p13, %p1289_p12 }
  0x20   : > { %p1292_p3 = pneg %p1291_p0 }
  0x22   : > { %p1297_p7 = pnand %p1295_p5, %p1292_p3 }
  0x24   : > { %1300 = shalt.err (!%p1297_p7)
}
  0x25   : > { %s1301_s22 = scalar_lea.vmem %s223_s12, 8192  ;;  %p1309_p1 = scmp.lt.s32.totalorder %s223_s12, %s223_s12 }
  0x26   : > { %p1302_p9 = scmp.ne.s32.totalorder %s223_s12, %s1301_s22  ;;  %p1310_p4 = scmp.lt.s32.totalorder %s1301_s22, %s1301_s22 }
  0x28   : > { %p1304_p10 = pnand %p1302_p9, %p1290_p13  ;;  %p1311_p8 = por %p1310_p4, %p1309_p1 }
  0x2a   : > { %p1305_p6 = pneg %p1304_p10 }
  0x2c   : > { %p1312_p2 = pnand %p1311_p8, %p1305_p6 }
  0x2e   : > { %1315 = shalt.err (!%p1312_p2)
}
  0x2f   : > { %s1467_s4 = smov 128   ;;  %s1468_s29 = smov 8  }
  0x30   : > { %1204 = dma.hbm_to_vmem [thread:$0]  (!%p1578_p11), %s1811_s1, 8192, %s223_s12, [#allocation10], %s1467_s4, %s1467_s4, %s1468_s29  }
  0x31   : > { %p43_p1 = scmp.ge.s32.totalorder %s41_s14, 2  ;;  %s50_s16 = sadd.s32 1, %s1452_s25 }
  0x32   : > { %p57_p2 = scmp.ne.s32.totalorder %s1452_s25, %s1448_s24  ;;  %p58_p4 = scmp.eq.s32.totalorder %s1464_s28, 0 }
  0x33   : > { %s1844_s14 = smov (%p43_p1, %s41_s14), 0  ;;  %p1828_p8 = scmp.ne.s32.totalorder %s1822_s7, 0 }
  0x34   : > { %p1605_p6 = por %p58_p4, %p57_p2  ;;  %s45_s13 = ssub.s32 %s1460_s27, %s1844_s14 }
  0x35   : > { %p1611_p10 = por %p1828_p8, %p57_p2  ;;  %p1217_p12 = scmp.lt.s32.totalorder %s1464_s28, 2 }
  0x36   : > { %p48_p11 = scmp.eq.s32.totalorder %s45_s13, 0  ;;  %s245_s12 = sand.u32 1, %s1452_s25  }
  0x37   : > { %s1032_s19 = sshll.u32 %s245_s12, 5  ;;  %s1048_s21 = sshll.u32 %s1460_s27, 9 }
  0x38   : > { %s1620_s20 = scalar_select %p48_p11, %s1452_s25, %s50_s16  }
  0x39   : > { %s1626_s29 = scalar_lea.hbm %s1810_s0, %s1048_s21  ;;  %s249_s7 = scalar_lea.vmem [#allocation6], %s1032_s19 }
  0x3a   : > { %s259_s11 = sshll.u32 %s249_s7, 4  ;;  %p1632_p13 = pnand %p1217_p12, %p1605_p6  ;;  %s1628_s11 = int_to_ptr.vmem [resolvable:$true] %s259_s11 }
  0x3b   : > { %s246_s16 = scalar_lea.sflag [#allocation7], %s245_s12  ;;  %s1316_s13 = scalar_lea.hbm %s1626_s29, 512 }
  0x3c   : > { %p1317_p0 = scmp.ne.s32.totalorder %s1626_s29, %s1316_s13  ;;  %p1318_p3 = pneg %p1632_p13 }
  0x3d   : > { %s1321_s22 = scalar_lea.hbm %s1810_s0, 1024  ;;  %p1322_p9 = scmp.lt.u32.totalorder %s1626_s29, %s1810_s0 }
  0x3e   : > { %p1319_p5 = pnand %p1318_p3, %p1317_p0  ;;  %p1323_p1 = scmp.lt.u32.totalorder %s1321_s22, %s1316_s13 }
  0x3f   : > { %p1325_p4 = scmp.lt.u32.totalorder %s1316_s13, %s1626_s29 }
  0x40   : > { %p1320_p7 = pneg %p1319_p5  ;;  %p1324_p2 = por %p1323_p1, %p1322_p9 }
  0x42   : > { %p1326_p6 = por %p1325_p4, %p1324_p2 }
  0x44   : > { %p1327_p8 = pnand %p1326_p6, %p1320_p7 }
  0x46   : > { %1330 = shalt.err (!%p1327_p8)
}
  0x47   : > { %s1331_s12 = scalar_lea.vmem %s1628_s11, 512  ;;  %s1469_s7 = smov [#allocation6]  }
  0x48   : > { %p1332_p12 = scmp.ne.s32.totalorder %s1628_s11, %s1331_s12  ;;  %s1336_s19 = sshll.u32 %s1469_s7, 4  ;;  %s1337_s19 = int_to_ptr.vmem [resolvable:$false] %s1336_s19 }
  0x49   : > { %s1338_s21 = scalar_lea.vmem %s1337_s19, 1024  ;;  %p1339_p5 = scmp.lt.s32.totalorder %s1628_s11, %s1337_s19 }
  0x4a   : > { %p1334_p11 = pnand %p1332_p12, %p1318_p3  ;;  %p1340_p9 = scmp.lt.s32.totalorder %s1338_s21, %s1331_s12 }
  0x4c   : > { %p1335_p0 = pneg %p1334_p11  ;;  %p1341_p1 = por %p1340_p9, %p1339_p5 }
  0x4e   : > { %p1342_p2 = pnand %p1341_p1, %p1335_p0 }
  0x50   : > { %1345 = shalt.err (!%p1342_p2)
}
  0x51   : > { %1208 = dma.hbm_to_vmem [thread:$0]  (!%p1632_p13), %s1626_s29, 512, %s1628_s11, %s246_s16  }
  0x52   : > { %p1831_p7 = scmp.ne.s32.totalorder %s1825_s10, 0 }
  0x53   : > { %s1664_s13 = sand.u32 (!%p1831_p7), 1, %s1448_s24   ;;  %p1832_p3 = scmp.ne.s32.totalorder (!%p1831_p7), %s1823_s8, 0 }
  0x54   : > { %268 = sbr.rel (%p1831_p7) target bundleno = 1201 (0x4b1), region = 40  ;;  %s1036_s22 = sshll.u32 (!%p1831_p7), %s1664_s13, 5 }
  0x55   : > { %s271_s17 = scalar_lea.sflag (!%p1831_p7), [#allocation7], %s1664_s13  ;;  %s1668_s4 = scalar_lea.vmem (!%p1831_p7), [#allocation6], %s1036_s22 }
  0x5b   : > { %1427 = dma.done.wait (%p1832_p3), %s271_s17, 512  }
  0x5c   : > { %1429 = vsyncadd (%p1832_p3), %s271_s17, 4294966784  ;;  %p1833_p13 = scmp.ne.s32.totalorder %s1821_s30, 0 }
  0x5e   : > { %1431 = dma.done.wait (%p1833_p13), [#allocation10], 8192  }
  0x5f   : > { %1433 = vsyncadd (%p1833_p13), [#allocation10], 4294959104  ;;  %v343_v1 = vld [vmem:[#allocation9 + $0x80] sm:$0xff]  ;;  %v344_v2 = vld [vmem:[#allocation9 + $0x88] sm:$0xff]  ;;  %vm1471_vm0 = vmmov 0   ;;  %vm315_vm1 = vcmask 0  }
  0x60   : > { %v327_v3 = vld [vmem:[#allocation9] sm:$0xff]  ;;  %v1127_v4 = vpack.c.bf16 %v344_v2, %v343_v1  ;;  %v328_v5 = vld [vmem:[#allocation9 + $0x8] sm:$0xff]  ;;  %v345_v12 = vld [vmem:[#allocation9 + $0x90] sm:$0xff]  ;;  %vm620_vm2 = vcmask 57344   ;;  %s1700_s11 = scalar_lea.vmem [#allocation12], %s1664_s13  ;;  %vm660_vm3 = vcmask 64512  }
  0x61   : > { %v375_v6 = vld [vmem:[#allocation9 + $0x180] sm:$0xff]  ;;  %v376_v7 = vld [vmem:[#allocation9 + $0x188] sm:$0xff]  ;;  %v1129_v8 = vpack.c.bf16 %v328_v5, %v327_v3  ;;  %v346_v14 = vld [vmem:[#allocation9 + $0x98] sm:$0xff]  ;;  %s1038_s15 = sshll.u32 %s1664_s13, 2  ;;  %s1049_s16 = sshll.u32 %s1456_s26, 6 }
  0x62   : > { %v1159_v9 = vpack.c.bf16 %v376_v7, %v375_v6  ;;  %v359_v10 = vld [vmem:[#allocation9 + $0x100] sm:$0xff]  ;;  %v360_v11 = vld [vmem:[#allocation9 + $0x108] sm:$0xff]  ;;  %1128 = vmatprep.subr.bf16.mxu0 %v1127_v4  ;;  %v329_v15 = vld [vmem:[#allocation9 + $0x10] sm:$0xff]  ;;  %v1131_v17 = vpack.c.bf16 %v346_v14, %v345_v12  ;;  %s304_s12 = scalar_lea.vmem [#allocation11], %s1038_s15  ;;  %s1045_s19 = sshll.u32 %s1456_s26, 4 }
  0x63   : > { %v1161_v13 = vpack.c.bf16 %v360_v11, %v359_v10  ;;  %v330_v16 = vld [vmem:[#allocation9 + $0x18] sm:$0xff]  ;;  %1130 = vmatpush3.bf16.msra.mxu0 %v1129_v8  ;;  %v377_v19 = vld [vmem:[#allocation9 + $0x190] sm:$0xff]  ;;  %v347_v24 = vld [vmem:[#allocation9 + $0xa0] sm:$0xff]  ;;  %s895_s7 = sshll.u32 %s304_s12, 4  ;;  %s908_s21 = sshll.u32 %s1700_s11, 4  ;;  %s1730_s7 = int_to_ptr.vmem [resolvable:$true] %s895_s7  ;;  %s1737_s21 = int_to_ptr.vmem [resolvable:$true] %s908_s21 }
  0x64   : > { %1160 = vmatprep.subr.bf16.mxu1 %v1159_v9  ;;  %v1133_v18 = vpack.c.bf16 %v330_v16, %v329_v15  ;;  %v378_v20 = vld [vmem:[#allocation9 + $0x198] sm:$0xff]  ;;  %v361_v21 = vld [vmem:[#allocation9 + $0x110] sm:$0xff]  ;;  %v348_v25 = vld [vmem:[#allocation9 + $0xa8] sm:$0xff]  ;;  %1132 = vmatprep.subr.bf16.mxu0 %v1131_v17  ;;  %s1735_s10 = scalar_lea.hbm %s1816_s6, %s1045_s19  ;;  %s877_s26 = scalar_lea.sflag [#allocation8], %s1664_s13 }
  0x65   : > { %1162 = vmatpush3.bf16.msra.mxu1 %v1161_v13  ;;  %v1163_v22 = vpack.c.bf16 %v378_v20, %v377_v19  ;;  %v362_v23 = vld [vmem:[#allocation9 + $0x118] sm:$0xff]  ;;  %v1135_v27 = vpack.c.bf16 %v348_v25, %v347_v24  ;;  %v331_v28 = vld [vmem:[#allocation9 + $0x20] sm:$0xff]  ;;  %v332_v29 = vld [vmem:[#allocation9 + $0x28] sm:$0xff]  ;;  %s1346_s29 = scalar_lea.vmem %s1730_s7, 64  ;;  %s1475_s15 = smov [#allocation11]  }
  0x66   : > { %v1165_v26 = vpack.c.bf16 %v362_v23, %v361_v21  ;;  %v379_v30 = vld [vmem:[#allocation9 + $0x1a0] sm:$0xff]  ;;  %v380_v31 = vld [vmem:[#allocation9 + $0x1a8] sm:$0xff]  ;;  %v1137_v34 = vpack.c.bf16 %v332_v29, %v331_v28  ;;  %v349_v36 = vld [vmem:[#allocation9 + $0xb0] sm:$0xff]  ;;  %p1347_p4 = scmp.ne.s32.totalorder %s1730_s7, %s1346_s29 }
  0x67   : > { %1164 = vmatprep.subr.bf16.mxu1 %v1163_v22  ;;  %v363_v32 = vld [vmem:[#allocation9 + $0x120] sm:$0xff]  ;;  %v364_v33 = vld [vmem:[#allocation9 + $0x128] sm:$0xff]  ;;  %1134 = vmatpush3.bf16.msra.mxu0 %v1133_v18  ;;  %v1167_v35 = vpack.c.bf16 %v380_v31, %v379_v30  ;;  %v350_v37 = vld [vmem:[#allocation9 + $0xb8] sm:$0xff] }
  0x68   : > { %v333_v38 = vld [vmem:[#allocation9 + $0x30] sm:$0xff]  ;;  %1136 = vmatprep.subr.bf16.mxu0 %v1135_v27  ;;  %v1169_v39 = vpack.c.bf16 %v364_v33, %v363_v32  ;;  %v1139_v40 = vpack.c.bf16 %v350_v37, %v349_v36  ;;  %v334_v41 = vld [vmem:[#allocation9 + $0x38] sm:$0xff]  ;;  %v351_v47 = vld [vmem:[#allocation9 + $0xc0] sm:$0xff]  ;;  %v1470_v37 = vmov 0.0   ;;  %p1348_p6 = pnand %p1347_p4, %p1611_p10 }
  0x69   : > { %1166 = vmatpush3.bf16.msra.mxu1 %v1165_v26  ;;  %v381_v42 = vld [vmem:[#allocation9 + $0x1b0] sm:$0xff]  ;;  %v382_v43 = vld [vmem:[#allocation9 + $0x1b8] sm:$0xff]  ;;  %v352_v48 = vld [vmem:[#allocation9 + $0xc8] sm:$0xff]  ;;  %v1141_v49 = vpack.c.bf16 %v334_v41, %v333_v38  ;;  %317 = vst.msk [vmem:[#allocation3] sm:$0x1] %vm315_vm1, %v1470_v37 }
  0x6a   : > { %1168 = vmatprep.subr.bf16.mxu1 %v1167_v35  ;;  %v1171_v44 = vpack.c.bf16 %v382_v43, %v381_v42  ;;  %v365_v45 = vld [vmem:[#allocation9 + $0x130] sm:$0xff]  ;;  %v366_v46 = vld [vmem:[#allocation9 + $0x138] sm:$0xff]  ;;  %v383_v50 = vld [vmem:[#allocation9 + $0x1c0] sm:$0xff]  ;;  %v1143_v53 = vpack.c.bf16 %v352_v48, %v351_v47  ;;  %p1349_p8 = pneg %p1348_p6 }
  0x6b   : > { %1138 = vmatpush3.bf16.msra.mxu0 %v1137_v34  ;;  %v384_v51 = vld [vmem:[#allocation9 + $0x1c8] sm:$0xff]  ;;  %v1173_v52 = vpack.c.bf16 %v366_v46, %v365_v45  ;;  %v335_v54 = vld [vmem:[#allocation9 + $0x40] sm:$0xff]  ;;  %v353_v59 = vld [vmem:[#allocation9 + $0xd0] sm:$0xff] }
  0x6c   : > { %1140 = vmatprep.subr.bf16.mxu0 %v1139_v40  ;;  %v336_v55 = vld [vmem:[#allocation9 + $0x48] sm:$0xff]  ;;  %v367_v56 = vld [vmem:[#allocation9 + $0x140] sm:$0xff]  ;;  %v1175_v57 = vpack.c.bf16 %v384_v51, %v383_v50  ;;  %v354_v60 = vld [vmem:[#allocation9 + $0xd8] sm:$0xff]  ;;  %v1473_v51 = vmov -inf  }
  0x6d   : > { %1170 = vmatpush3.bf16.msra.mxu1 %v1169_v39  ;;  %v368_v58 = vld [vmem:[#allocation9 + $0x148] sm:$0xff]  ;;  %v385_v61 = vld [vmem:[#allocation9 + $0x1d0] sm:$0xff]  ;;  %v386_v62 = vld [vmem:[#allocation9 + $0x1d8] sm:$0xff]  ;;  %v1145_v63 = vpack.c.bf16 %v336_v55, %v335_v54  ;;  %v1147_v1 = vpack.c.bf16 %v354_v60, %v353_v59  ;;  %v1472_v39 = vmov 0   ;;  %316 = vst.msk [vmem:[#allocation2] sm:$0x1] %vm315_vm1, %v1473_v51 }
  0x6e   : > { %1172 = vmatprep.subr.bf16.mxu1 %v1171_v44  ;;  %v1177_v0 = vpack.c.bf16 %v368_v58, %v367_v56  ;;  %v337_v2 = vld [vmem:[#allocation9 + $0x50] sm:$0xff]  ;;  %v338_v3 = vld [vmem:[#allocation9 + $0x58] sm:$0xff]  ;;  %v1179_v5 = vpack.c.bf16 %v386_v62, %v385_v61  ;;  %v355_v7 = vld [vmem:[#allocation9 + $0xe0] sm:$0xff]  ;;  %1276 = vset.pattern.permute.xlu0 %v1472_v39 }
  0x6f   : > { %1142 = vmatpush3.bf16.msra.mxu0 %v1141_v49  ;;  %v369_v4 = vld [vmem:[#allocation9 + $0x150] sm:$0xff]  ;;  %v370_v6 = vld [vmem:[#allocation9 + $0x158] sm:$0xff]  ;;  %v356_v8 = vld [vmem:[#allocation9 + $0xe8] sm:$0xff]  ;;  %v1149_v11 = vpack.c.bf16 %v338_v3, %v337_v2  ;;  %1277 = vset.pattern.permute.xlu1 %v1472_v39 }
  0x70   : > { %1144 = vmatprep.subr.bf16.mxu0 %v1143_v53  ;;  %v387_v9 = vld [vmem:[#allocation9 + $0x1e0] sm:$0xff]  ;;  %v388_v10 = vld [vmem:[#allocation9 + $0x1e8] sm:$0xff]  ;;  %v1181_v14 = vpack.c.bf16 %v370_v6, %v369_v4  ;;  %v1151_v15 = vpack.c.bf16 %v356_v8, %v355_v7  ;;  %v357_v20 = vld [vmem:[#allocation9 + $0xf0] sm:$0xff] }
  0x71   : > { %1174 = vmatpush3.bf16.msra.mxu1 %v1173_v52  ;;  %v339_v12 = vld [vmem:[#allocation9 + $0x60] sm:$0xff]  ;;  %v340_v13 = vld [vmem:[#allocation9 + $0x68] sm:$0xff]  ;;  %v1183_v19 = vpack.c.bf16 %v388_v10, %v387_v9  ;;  %v358_v21 = vld [vmem:[#allocation9 + $0xf8] sm:$0xff]  ;;  %v318_v52 = vlaneseq }
  0x72   : > { %1176 = vmatprep.subr.bf16.mxu1 %v1175_v57  ;;  %v371_v16 = vld [vmem:[#allocation9 + $0x160] sm:$0xff]  ;;  %v372_v17 = vld [vmem:[#allocation9 + $0x168] sm:$0xff]  ;;  %v326_v22 = vld [vmem:[%s1668_s4 + $0x18] sm:$0xff]  ;;  %v1153_v25 = vpack.c.bf16 %v340_v13, %v339_v12  ;;  %v1155_v27 = vpack.c.bf16 %v358_v21, %v357_v20 }
  0x73   : > { %1146 = vmatpush3.bf16.msra.mxu0 %v1145_v63  ;;  %v324_v18 = vld [vmem:[%s1668_s4 + $0x8] sm:$0xff]  ;;  %v389_v23 = vld [vmem:[#allocation9 + $0x1f0] sm:$0xff]  ;;  %v390_v24 = vld [vmem:[#allocation9 + $0x1f8] sm:$0xff]  ;;  %532 = vmatprep.mubr.f32.mxu1 %v326_v22  ;;  %v1185_v26 = vpack.c.bf16 %v372_v17, %v371_v16  ;;  %v547_v53 = vshrl.u32 %v318_v52, 7  ;;  %vm1707_vm4 = vcmp.lt.s32.totalorder %v318_v52, 512 }
  0x74   : > { %1148 = vmatprep.subr.bf16.mxu0 %v1147_v1  ;;  %462 = vmatprep.mubr.f32.mxu0 %v324_v18  ;;  %v341_v28 = vld [vmem:[#allocation9 + $0x70] sm:$0xff]  ;;  %v342_v29 = vld [vmem:[#allocation9 + $0x78] sm:$0xff]  ;;  %v1187_v30 = vpack.c.bf16 %v390_v24, %v389_v23  ;;  %v323_v35 = vld [vmem:[%s1668_s4] sm:$0xff]  ;;  %322 = vst.msk [vmem:[#allocation4] sm:$0xf] %vm1707_vm4, %v1470_v37 }
  0x75   : > { %1178 = vmatpush3.bf16.msra.mxu1 %v1177_v0  ;;  %v373_v31 = vld [vmem:[#allocation9 + $0x170] sm:$0xff]  ;;  %v374_v32 = vld [vmem:[#allocation9 + $0x178] sm:$0xff]  ;;  %v1157_v33 = vpack.c.bf16 %v342_v29, %v341_v28  ;;  %v1695_v54 = vsub.s32 0, %v547_v53  ;;  %v1474_v17 = vmov 1966171168  }
  0x76   : > { %1180 = vmatprep.subr.bf16.mxu1 %v1179_v5  ;;  %v1189_v34 = vpack.c.bf16 %v374_v32, %v373_v31  ;;  %v325_v36 = vld [vmem:[%s1668_s4 + $0x10] sm:$0xff]  ;;  %v540_v38 = vld [vmem:[#allocation5] sm:$0x1]  ;;  %v1039_v41 = vld [vmem:[%s1812_s2] ss:$0 sm:$0xff]  ;;  %s1728_s4 = scalar_lea.hbm %s1815_s5, %s1049_s16  ;;  %s1350_s16 = sshll.u32 %s1475_s15, 4  ;;  %s1351_s16 = int_to_ptr.vmem [resolvable:$false] %s1350_s16 }
  0x77   : > { %1150 = vmatpush3.bf16.msra.mxu0 %v1149_v11  ;;  %543 = vperm.xlu0 %1276, %v540_v38   ;;  %v539_v50 = vld [vmem:[%s1813_s3] sm:$0x1]  ;;  %v641_v11 = vld [vmem:[#allocation3] sm:$0x1]  ;;  %s1352_s22 = scalar_lea.vmem %s1351_s16, 128  ;;  %p1353_p12 = scmp.lt.s32.totalorder %s1730_s7, %s1351_s16 }
  0x78   : > { %1152 = vmatprep.subr.bf16.mxu0 %v1151_v15  ;;  %v624_v61 = vld [vmem:[#allocation2] sm:$0x1]  ;;  %p1354_p11 = scmp.lt.s32.totalorder %s1352_s22, %s1346_s29 }
  0x79   : > { %1182 = vmatpush3.bf16.msra.mxu1 %v1181_v14 }
  0x7a   : > { %1184 = vmatprep.subr.bf16.mxu1 %v1183_v19  ;;  %p1355_p0 = por %p1354_p11, %p1353_p12 }
  0x7b   : > { %1154 = vmatpush3.bf16.msra.mxu0 %v1153_v25  ;;  %v649_v31 = vld [vmem:[#allocation4] sm:$0xf] }
  0x7c   : > { %1156 = vmatprep.subr.bf16.mxu0 %v1155_v27  ;;  %p1356_p5 = pnand %p1355_p0, %p1349_p8 }
  0x7d   : > { %1186 = vmatpush3.bf16.msra.mxu1 %v1185_v26 }
  0x7e   : > { %1188 = vmatprep.subr.bf16.mxu1 %v1187_v30 }
  0x7f   : > { %1158 = vmatpush3.bf16.msra.mxu0 %v1157_v33 }
  0x80   : > { %1122 = vmatprep.subr.mxu0 %v1470_v37 }
  0x81   : > { %1190 = vmatpush3.bf16.msra.mxu1 %v1189_v34 }
  0x82   : > { %664 = vmatprep.subr.mxu1 %v324_v18  ;;  %463 = vmatmul.mubr.f32.vlgmr.msra.gmra.mrb[0].mxu0 %v323_v35  ;;  %v813_v18 = vunpack.c.l.s4 %v1474_v17 }
  0x83   : > { %1124 = vmatprep.mubr.msk.f32.mxu0 %vm1471_vm0, %v1470_v37 }
  0x84   : > { %533 = vmatmul.mubr.f32.vlgmr.msra.gmra.mrb[0].mxu1 %v325_v36  ;;  %v814_v19 = vunpack.c.0.s8 %v813_v18 }
  0x85   : > { %665 = vmatpush1.msra.mxu1 %v323_v35  ;;  %728 = vmatprep.mubr.f32.mxu1 %v1470_v37 }
  0x86   : > { %v817_v23 = vsub.s32 %v814_v19, %v547_v53 }
  0xf6   : > { %v544_v55 = vpop.permute.xlu0 %543 }
  0xf7   : > { %v549_v56 = vrot.slane %v544_v55, %v1695_v54 }
 0x155   : > { %v1082_v40 = vpop.f32.mrb[0].mxu0 }
 0x156   : > { %v1083_v42 = vpop.f32.mrb[1].mxu0 }
 0x157   : > { %v1117_v43 = vpop.f32.mrb[0].mxu1  ;;  %v1084_v44 = vadd.f32 %v1083_v42, %v1082_v40 }
 0x158   : > { %v1118_v45 = vpop.f32.mrb[1].mxu1 }
 0x159   : > { %v1119_v46 = vadd.f32 %v1118_v45, %v1117_v43  ;;  %v465_v47 = vadd.f32 %v1084_v44, %v1039_v41 }
 0x15b   : > { %v535_v48 = vadd.f32 %v1119_v46, %v465_v47 }
 0x15d   : > { %1278 = vtanh.f32 %v535_v48 }
 0x167   : > { %v1279_v49 = vpop.eup %1278 }
 0x168   : > { %1123 = vmatpush3.xpose.msra.mxu0 %v1279_v49 }
 0x169   : > { %735 = vmatprep.subr.mxu0 %v326_v22 }
 0x16b   : > { %1125 = vmatmul.mubr.f32.vlgmr.msra.gmra.mrb[2].mxu0 %v539_v50 }
 0x16c   : > { %736 = vmatpush1.msra.mxu0 %v325_v36  ;;  %799 = vmatprep.mubr.f32.mxu0 %v1470_v37 }
 0x23e   : > { %v616_v57 = vpop.f32.mrb[2].mxu0 }
 0x23f   : > { %v617_v58 = vadd.f32 %v616_v57, %v549_v56  ;;  %v1126_v59 = vpop.f32.mrb[3].mxu0 }
 0x241   : > { %v621_v60 = vsel %vm620_vm2, %v617_v58, -inf  ;;  %842 = vst.msk [vmem:[%s1700_s11] sm:$0x1] %vm620_vm2, %v617_v58 }
 0x242   : > { %622 = vmax.xlane.f32.xlu0 %v621_v60 }
 0x248   : > { %v860_v38 = vld [vmem:[%s1700_s11] sm:$0x1] }
 0x2cf   : > { %v623_v62 = vpop.xlane.xlu0 %622 }
 0x2d0   : > { %v625_v63 = vmax.f32 %v624_v61, %v623_v62 }
 0x2d2   : > { %v626_v0 = vsub.f32 %v624_v61, %v625_v63  ;;  %841 = vst.msk [vmem:[#allocation2] sm:$0x1] %vm315_vm1, %v625_v63  ;;  %631 = vperm.xlu1 %1277, %v625_v63  }
 0x2d4   : > { %v627_v8 = vmul.f32 1.442695, %v626_v0 }
 0x2d9   : > { %v861_v1 = vld [vmem:[#allocation2] sm:$0x1] }
 0x2da   : > { %864 = vperm.xlu0 %1276, %v861_v1  }
 0x351   : > { %v632_v2 = vpop.permute.xlu1 %631 }
 0x352   : > { %v637_v3 = vrot.slane %v632_v2, %v1695_v54 }
 0x354   : > { %v638_v4 = vsub.f32 %v617_v58, %v637_v3 }
 0x356   : > { %v639_v5 = vmul.f32 1.442695, %v638_v4 }
 0x358   : > { %1280 = vpow2.f32 %v639_v5 }
 0x359   : > { %1282 = vpow2.f32 %v627_v8  ;;  %v865_v36 = vpop.permute.xlu0 %864 }
 0x35a   : > { %v870_v37 = vrot.slane %v865_v36, %v1695_v54 }
 0x35c   : > { %v871_v39 = vsub.f32 %v860_v38, %v870_v37 }
 0x35e   : > { %v872_v40 = vmul.f32 1.442695, %v871_v39 }
 0x362   : > { %v1281_v6 = vpop.eup %1280 }
 0x363   : > { %1040 = vmatmul.mubr.msk.f32.vlgmr.msra.gmra.mrb[2].mxu1 %vm660_vm3, %v1281_v6  ;;  %1041 = vmatmul.mubr.msk.f32.vlgmr.msra.gmra.mrb[4].mxu0 %vm660_vm3, %v1281_v6  ;;  %v643_v7 = vsel %vm620_vm2, %v1281_v6, 0.0  ;;  %v1283_v10 = vpop.eup %1282 }
 0x364   : > { %644 = vadd.xlane.f32.xlu1 %v643_v7  ;;  %v642_v12 = vmul.f32 %v1283_v10, %v641_v11 }
 0x375   : > { %652 = vperm.xlu1 %1277, %v1283_v10  }
 0x3f1   : > { %v645_v13 = vpop.xlane.xlu1 %644 }
 0x3f2   : > { %v646_v14 = vadd.f32 %v645_v13, %v642_v12 }
 0x3f4   : > { %648 = vst.msk [vmem:[#allocation3] sm:$0x1] %vm315_vm1, %v646_v14 }
 0x3f5   : > { %v653_v20 = vpop.permute.xlu1 %652 }
 0x3f6   : > { %v658_v28 = vrot.slane %v653_v20, %v1695_v54 }
 0x3f8   : > { %v659_v33 = vmul.f32 %v658_v28, %v649_v31 }
 0x3fb   : > { %v846_v15 = vld [vmem:[#allocation3] sm:$0x1] }
 0x3fc   : > { %1284 = vrcp.f32 %v846_v15 }
 0x3fd   : > { %1286 = vpow2.f32 %v872_v40 }
 0x406   : > { %v1285_v16 = vpop.eup %1284 }
 0x407   : > { %851 = vperm.xlu0 %1276, %v1285_v16   ;;  %v1287_v43 = vpop.eup %1286 }
 0x436   : > { %v730_v21 = vpop.f32.mrb[2].mxu1  ;;  %v801_v22 = vpop.f32.mrb[4].mxu0 }
 0x437   : > { %v732_v24 = vpop.f32.mrb[3].mxu1  ;;  %v803_v25 = vpop.f32.mrb[5].mxu0 }
 0x438   : > { %v810_v26 = vcombine.low %v730_v21, %v732_v24  ;;  %v811_v27 = vcombine.low %v801_v22, %v803_v25 }
 0x43a   : > { %v818_v29 = vrot.slane %v810_v26, %v817_v23  ;;  %v825_v30 = vrot.slane %v811_v27, %v817_v23 }
 0x43c   : > { %v826_v32 = vcombine.low %v818_v29, %v825_v30 }
 0x43e   : > { %v833_v34 = vrot.slane %v826_v32, %v817_v23 }
 0x440   : > { %v835_v35 = vadd.f32 %v833_v34, %v659_v33 }
 0x442   : > { %840 = vst.msk [vmem:[#allocation4] sm:$0xf] %vm1707_vm4, %v835_v35 }
 0x449   : > { %v848_v44 = vld [vmem:[#allocation4] sm:$0xf] }
 0x486   : > { %v852_v41 = vpop.permute.xlu0 %851 }
 0x487   : > { %v857_v42 = vrot.slane %v852_v41, %v1695_v54 }
 0x489   : > { %v858_v45 = vmul.f32 %v857_v42, %v848_v44  ;;  %v874_v46 = vmul.f32 %v1287_v43, %v857_v42 }
 0x48b   : > { %875 = vst.msk [vmem:[%s1700_s11] sm:$0x1] %vm620_vm2, %v874_v46 }
 0x48c   : > { %859 = vst.msk [vmem:[%s304_s12] sm:$0xf] %vm1707_vm4, %v858_v45 }
 0x48d   : > { %1359 = shalt.err (!%p1356_p5)
}
 0x48e   : > { %s1360_s11 = scalar_lea.hbm %s1728_s4, 64  ;;  %s1364_s17 = scalar_lea.hbm %s1815_s5, 128 }
 0x48f   : > { %p1361_p9 = scmp.ne.s32.totalorder %s1728_s4, %s1360_s11  ;;  %p1365_p7 = scmp.lt.u32.totalorder %s1728_s4, %s1815_s5 }
 0x490   : > { %p1366_p3 = scmp.lt.u32.totalorder %s1364_s17, %s1360_s11  ;;  %p1368_p4 = scmp.lt.u32.totalorder %s1360_s11, %s1728_s4 }
 0x491   : > { %p1362_p1 = pnand %p1361_p9, %p1611_p10 }
 0x492   : > { %p1367_p13 = por %p1366_p3, %p1365_p7 }
 0x493   : > { %p1363_p2 = pneg %p1362_p1 }
 0x494   : > { %p1369_p6 = por %p1368_p4, %p1367_p13 }
 0x496   : > { %p1370_p8 = pnand %p1369_p6, %p1363_p2 }
 0x498   : > { %1373 = shalt.err (!%p1370_p8)
}
 0x499   : > { %1197 = dma.vmem_to_hbm [thread:$0]  (%p1611_p10), %s1730_s7, 64, %s1728_s4, %s877_s26  }
 0x49a   : > { %s882_s29 = scalar_lea.sflag [#allocation13], %s1664_s13  ;;  %s1374_s15 = scalar_lea.vmem %s1737_s21, 16 }
 0x49b   : > { %p1375_p12 = scmp.ne.s32.totalorder %s1737_s21, %s1374_s15  ;;  %s1476_s16 = smov [#allocation12]  }
 0x49c   : > { %s1378_s22 = sshll.u32 %s1476_s16, 4  ;;  %s1379_s22 = int_to_ptr.vmem [resolvable:$false] %s1378_s22 }
 0x49d   : > { %p1376_p11 = pnand %p1375_p12, %p1611_p10  ;;  %s1380_s11 = scalar_lea.vmem %s1379_s22, 32 }
 0x49e   : > { %p1381_p5 = scmp.lt.s32.totalorder %s1737_s21, %s1379_s22  ;;  %p1382_p9 = scmp.lt.s32.totalorder %s1380_s11, %s1374_s15 }
 0x49f   : > { %p1377_p0 = pneg %p1376_p11 }
 0x4a0   : > { %p1383_p1 = por %p1382_p9, %p1381_p5 }
 0x4a2   : > { %p1384_p2 = pnand %p1383_p1, %p1377_p0 }
 0x4a4   : > { %1387 = shalt.err (!%p1384_p2)
}
 0x4a5   : > { %s1388_s13 = scalar_lea.hbm %s1735_s10, 16  ;;  %s1392_s26 = scalar_lea.hbm %s1816_s6, 32 }
 0x4a6   : > { %p1389_p7 = scmp.ne.s32.totalorder %s1735_s10, %s1388_s13  ;;  %p1393_p4 = scmp.lt.u32.totalorder %s1735_s10, %s1816_s6 }
 0x4a7   : > { %p1394_p6 = scmp.lt.u32.totalorder %s1392_s26, %s1388_s13  ;;  %p1396_p12 = scmp.lt.u32.totalorder %s1388_s13, %s1735_s10 }
 0x4a8   : > { %p1390_p3 = pnand %p1389_p7, %p1611_p10 }
 0x4a9   : > { %p1395_p8 = por %p1394_p6, %p1393_p4 }
 0x4aa   : > { %p1391_p13 = pneg %p1390_p3 }
 0x4ab   : > { %p1397_p11 = por %p1396_p12, %p1395_p8 }
 0x4ad   : > { %p1398_p0 = pnand %p1397_p11, %p1391_p13 }
 0x4af   : > { %1401 = shalt.err (!%p1398_p0)
}
 0x4b0   : > { %1198 = dma.vmem_to_hbm [thread:$0]  (%p1611_p10), %s1737_s21, 16, %s1735_s10, %s882_s29  }
 0x4b1 PF: > { %s920_s17 = sand.u32 1, %s1444_s23   ;;  %p1836_p5 = scmp.ne.s32.totalorder %s1824_s9, 0 }
 0x4b2   : > { %p1837_p9 = scmp.ge.s32.totalorder %s1464_s28, 2  ;;  %s921_s30 = scalar_lea.sflag [#allocation8], %s920_s17 }
 0x4b4   : > { %p1210_p1 = pnand %p1837_p9, %p1836_p5 }
 0x4b6   : > { %1435 = dma.done.wait (!%p1210_p1), %s921_s30, 64  }
 0x4b7   : > { %1437 = vsyncadd (!%p1210_p1), %s921_s30, 4294967232  ;;  %s930_s8 = scalar_lea.sflag [#allocation13], %s920_s17 }
 0x4b8   : > { %1439 = dma.done.wait (!%p1210_p1), %s930_s8, 16  }
 0x4b9   : > { %1441 = vsyncadd (!%p1210_p1), %s930_s8, 4294967280  ;;  %s29_s28 = sadd.s32 1, %s1464_s28   ;;  %s1838_s23 = smov %s1448_s24 }
 0x4ba   : > { %p26_p2 = scmp.ge.s32.totalorder %s29_s28, 4   ;;  %s1839_s24 = smov %s1452_s25 }
 0x4bb   : > { %s1840_s25 = smov %s1620_s20  ;;  %s1841_s26 = smov %s1460_s27 }
 0x4bc   : > { %s1842_s27 = smov %s1844_s14  ;;  %28 = sbr.rel (!%p26_p2) target bundleno = 12 (0xc), region = 114 }
 0x4c3   :  { %934 = vsyncpa [#allocation7], 1 }
 0x4c4   :  { %936 = vsyncpa [#allocation7 + $0x1], 1 }
 0x4c5   :  { %937 = vsyncpa [#allocation10], 1 }
 0x4c6   :  { %938 = vsyncpa [#allocation8], 1 }
 0x4c7   :  { %940 = vsyncpa [#allocation8 + $0x1], 1 }
 0x4c8   :  { %941 = vsyncpa [#allocation13], 1 }
 0x4c9   :  { %943 = vsyncpa [#allocation13 + $0x1], 1 }

</bundles_post_ra>
